<compile_context>
chip_gen: v7x
topology: tpu7x:2x2x1
jax: 0.10.0
libtpu: 0.0.40
codegen_flags: <defaults>
</compile_context>

<pallas_src>
import jax
import jax.numpy as jnp
from jax.experimental import pallas as pl
from jax.experimental.pallas import tpu as pltpu

_FAST_PATH_MAX_ELEMS = 256 * 1024   # per array -> whole-array-in-VMEM fused path
_TILE_BYTES_BUDGET = 1 << 20        # per stream, per pipeline buffer (v5e-safe)


def _scalar_f32(x):
    return jnp.asarray(x, jnp.float32).reshape(())


def _round_up(x, m):
    return -(-x // m) * m


# --------------------------------------------------------------------------- #
# Streaming affine-normalize kernel: y = x * scale + shift (scalars in SMEM).  #
# --------------------------------------------------------------------------- #
def _affine_norm_kernel(params_ref, mu_ref, var_ref, out_mu_ref, out_var_ref):
    scale_mu = params_ref[0]
    shift_mu = params_ref[1]
    scale_var = params_ref[2]
    shift_var = params_ref[3]

    mu = mu_ref[...].astype(jnp.float32)
    vr = var_ref[...].astype(jnp.float32)

    out_mu_ref[...] = (mu * scale_mu + shift_mu).astype(out_mu_ref.dtype)
    nv = vr * scale_var + shift_var
    out_var_ref[...] = (jnp.maximum(nv, 0.0) + 1e-6).astype(out_var_ref.dtype)


# --------------------------------------------------------------------------- #
# Fast path: stats + normalize fused, whole arrays VMEM-resident.             #
# --------------------------------------------------------------------------- #
def _fast_path(mus, vars_, gamma_mu, beta_mu, gamma_var, beta_var, eps):
    n, d = mus.shape
    out_dtype = mus.dtype
    inv_total = 1.0 / float(n * d)   # static, folded into the kernel

    params = jnp.stack([
        _scalar_f32(gamma_mu), _scalar_f32(beta_mu),
        _scalar_f32(gamma_var), _scalar_f32(beta_var),
        _scalar_f32(eps),
    ])

    def kernel(params_ref, mu_ref, var_ref, out_mu_ref, out_var_ref):
        g_mu, b_mu = params_ref[0], params_ref[1]
        g_var, b_var = params_ref[2], params_ref[3]
        eps_s = params_ref[4]

        mu = mu_ref[...].astype(jnp.float32)
        vr = var_ref[...].astype(jnp.float32)

        # Exact two-pass population mean/std; data is VMEM-resident so the
        # second pass costs no extra HBM traffic.
        mean_mu = jnp.sum(mu, keepdims=True) * inv_total
        std_mu = jnp.sqrt(jnp.sum((mu - mean_mu) ** 2, keepdims=True) * inv_total)
        mean_var = jnp.sum(vr, keepdims=True) * inv_total
        std_var = jnp.sqrt(jnp.sum((vr - mean_var) ** 2, keepdims=True) * inv_total)

        scale_mu = g_mu / (std_mu + eps_s)
        shift_mu = b_mu - mean_mu * scale_mu
        scale_var = g_var / (std_var + eps_s)
        shift_var = b_var - mean_var * scale_var

        out_mu_ref[...] = (mu * scale_mu + shift_mu).astype(out_mu_ref.dtype)
        nv = vr * scale_var + shift_var
        out_var_ref[...] = (jnp.maximum(nv, 0.0) + 1e-6).astype(out_var_ref.dtype)

    return pl.pallas_call(
        kernel,
        out_shape=(jax.ShapeDtypeStruct((n, d), out_dtype),
                   jax.ShapeDtypeStruct((n, d), out_dtype)),
        in_specs=[
            pl.BlockSpec(memory_space=pltpu.MemorySpace.SMEM),   # params
            pl.BlockSpec(memory_space=pltpu.MemorySpace.VMEM),   # mus
            pl.BlockSpec(memory_space=pltpu.MemorySpace.VMEM),   # vars
        ],
        out_specs=(
            pl.BlockSpec(memory_space=pltpu.MemorySpace.VMEM),
            pl.BlockSpec(memory_space=pltpu.MemorySpace.VMEM),
        ),
    )(params, mus, vars_)


# --------------------------------------------------------------------------- #
# Streaming path helpers.                                                      #
# --------------------------------------------------------------------------- #
def _pick_row_tiling(rows, tile_cols, itemsize):
    """Pick (tile_rows, row_grid) for a (rows, tile_cols) streamed slab.

    - dtype-aware sublane quantum (8 for 4-byte, 16 for 2-byte, 32 for 1-byte);
    - <= ~1 MiB per stream per pipeline buffer (safe at v5e's 16 MiB default);
    - aim for >= 4 grid steps, nudged to an even count (v7x megacore balance).
    """
    sub = {1: 32, 2: 16}.get(itemsize, 8)
    cap = (_TILE_BYTES_BUDGET // (tile_cols * itemsize)) // sub * sub
    cap = max(sub, min(cap, 1024))
    if rows < 4 * sub:
        return rows, 1                      # single full-extent block (legal for any rows)
    tile_r = min(cap, max(sub, (rows // 4) // sub * sub))
    grid_r = -(-rows // tile_r)
    if grid_r > 1 and grid_r % 2:
        cand = min(cap, _round_up(-(-rows // (grid_r + 1)), sub))
        gr2 = -(-rows // cand)
        if gr2 % 2 == 0:
            tile_r, grid_r = cand, gr2
    return tile_r, grid_r


def _streaming_path(mus, vars_, gamma_mu, beta_mu, gamma_var, beta_var, eps):
    n, d = mus.shape
    out_dtype = mus.dtype
    total = n * d
    itemsize = jnp.dtype(out_dtype).itemsize

    # ---- Pass 1: single-pass fused global statistics (sum & sumsq together) --
    inv_total = 1.0 / float(total)
    mu32 = mus.astype(jnp.float32)      # fuses into the reductions, no HBM copy
    vr32 = vars_.astype(jnp.float32)
    s_mu, ss_mu = jnp.sum(mu32), jnp.sum(mu32 * mu32)
    s_vr, ss_vr = jnp.sum(vr32), jnp.sum(vr32 * vr32)
    mean_mu = s_mu * inv_total
    mean_var = s_vr * inv_total
    std_mu = jnp.sqrt(jnp.maximum(ss_mu * inv_total - mean_mu * mean_mu, 0.0))
    std_var = jnp.sqrt(jnp.maximum(ss_vr * inv_total - mean_var * mean_var, 0.0))

    g_mu, b_mu = _scalar_f32(gamma_mu), _scalar_f32(beta_mu)
    g_var, b_var = _scalar_f32(gamma_var), _scalar_f32(beta_var)
    eps_s = _scalar_f32(eps)

    # Hoist all scalar math out of the per-element path.
    scale_mu = g_mu / (std_mu + eps_s)
    shift_mu = b_mu - mean_mu * scale_mu
    scale_var = g_var / (std_var + eps_s)
    shift_var = b_var - mean_var * scale_var
    params = jnp.stack([scale_mu, shift_mu, scale_var, shift_var]).astype(jnp.float32)

    # ---- Lane-dense slab layout (avoid pad / slice copies when possible) -----
    if d % 128 == 0:
        slab_mu, slab_var = mus, vars_                 # zero-copy
        layout = "natural"
    else:
        lane_w = next((lw for lw in (1024, 512, 256, 128) if total % lw == 0), None)
        if lane_w is not None:                          # no pad, one reshape
            slab_mu = mus.reshape(total // lane_w, lane_w)
            slab_var = vars_.reshape(total // lane_w, lane_w)
            layout = "flat"
        else:                                           # truly ragged: pad fallback
            lane_w = 128
            rows = -(-total // lane_w)
            pad = rows * lane_w - total
            slab_mu = jnp.pad(mus.reshape(-1), (0, pad)).reshape(rows, lane_w)
            slab_var = jnp.pad(vars_.reshape(-1), (0, pad)).reshape(rows, lane_w)
            layout = "padded"

    R, C = slab_mu.shape
    if C <= 1024:
        tile_c = C
    else:
        tile_c = 512 if C % 512 == 0 else (256 if C % 256 == 0 else 128)
    tile_r, grid_r = _pick_row_tiling(R, tile_c, itemsize)
    grid = (grid_r, C // tile_c)

    idx = lambda i, j: (i, j)
    out_mu_slab, out_var_slab = pl.pallas_call(
        _affine_norm_kernel,
        out_shape=(jax.ShapeDtypeStruct((R, C), out_dtype),
                   jax.ShapeDtypeStruct((R, C), out_dtype)),
        grid=grid,
        in_specs=[
            pl.BlockSpec(memory_space=pltpu.MemorySpace.SMEM),   # (4,) affine params
            pl.BlockSpec((tile_r, tile_c), idx),                 # mus slab
            pl.BlockSpec((tile_r, tile_c), idx),                 # vars slab
        ],
        out_specs=(
            pl.BlockSpec((tile_r, tile_c), idx),
            pl.BlockSpec((tile_r, tile_c), idx),
        ),
        compiler_params=pltpu.CompilerParams(
            dimension_semantics=("parallel", "parallel"),
        ),
    )(params, slab_mu, slab_var)

    if layout == "natural":
        return out_mu_slab, out_var_slab
    if layout == "flat":
        return out_mu_slab.reshape(n, d), out_var_slab.reshape(n, d)
    out_mu = out_mu_slab.reshape(-1)[:total].reshape(n, d)
    out_var = out_var_slab.reshape(-1)[:total].reshape(n, d)
    return out_mu, out_var


# --------------------------------------------------------------------------- #
# Public wrapper.                                                              #
# --------------------------------------------------------------------------- #
def distribution_layer_norm(mus, vars_, gamma_mu, beta_mu, gamma_var, beta_var,
                            eps=1e-5, *, force_streaming=False):
    """Pallas DistributionLayerNorm.forward on stacked (num_cells, dim) arrays.

    Returns (normalized_mus, new_vars), same shape/dtype as the inputs.
    """
    assert mus.shape == vars_.shape and mus.ndim == 2
    n, d = mus.shape
    if not force_streaming and n * d <= _FAST_PATH_MAX_ELEMS:
        return _fast_path(mus, vars_, gamma_mu, beta_mu, gamma_var, beta_var, eps)
    return _streaming_path(mus, vars_, gamma_mu, beta_mu, gamma_var, beta_var, eps)


def _reference(mus, vars_, gamma_mu, beta_mu, gamma_var, beta_var, eps=1e-5):
    mus = mus.astype(jnp.float32)
    vars_ = vars_.astype(jnp.float32)
    mean_mu, std_mu = jnp.mean(mus), jnp.std(mus)        # population std (unbiased=False)
    mean_var, std_var = jnp.mean(vars_), jnp.std(vars_)
    nm = gamma_mu * (mus - mean_mu) / (std_mu + eps) + beta_mu
    nv = gamma_var * (vars_ - mean_var) / (std_var + eps) + beta_var
    return nm, jnp.maximum(nv, 0.0) + 1e-6


if __name__ == "__main__":
    key = jax.random.PRNGKey(0)
    k1, k2, k3, k4 = jax.random.split(key, 4)

    # Deterministic parameter init matching nn.Parameter(torch.ones/zeros(1)).
    gamma_mu, beta_mu, gamma_var, beta_var = 1.0, 0.0, 1.0, 0.0
    eps = 1e-5

    fn = jax.jit(distribution_layer_norm, static_argnames=("force_streaming",))

    # Case 1: module-sized input (num_cells=8, embedding_dim=32) -> fused fast path.
    mus = jax.random.normal(k1, (8, 32), dtype=jnp.float32)
    vars_ = jnp.exp(0.5 * jax.random.normal(k2, (8, 32), dtype=jnp.float32))
    out_mu, out_var = fn(mus, vars_, gamma_mu, beta_mu, gamma_var, beta_var, eps)
    jax.block_until_ready((out_mu, out_var))
    ref_mu, ref_var = _reference(mus, vars_, gamma_mu, beta_mu, gamma_var, beta_var, eps)
    assert out_mu.shape == (8, 32) and out_var.shape == (8, 32)
    assert jnp.allclose(out_mu, ref_mu, atol=1e-5, rtol=1e-5)
    assert jnp.allclose(out_var, ref_var, atol=1e-5, rtol=1e-5)

    # Case 2: lane-aligned input, forced onto the tiled streaming path (4x1 grid).
    mus2 = jax.random.normal(k3, (64, 256), dtype=jnp.float32)
    vars2 = jnp.exp(0.5 * jax.random.normal(k4, (64, 256), dtype=jnp.float32))
    out_mu2, out_var2 = fn(mus2, vars2, gamma_mu, beta_mu, gamma_var, beta_var, eps,
                           force_streaming=True)
    jax.block_until_ready((out_mu2, out_var2))
    ref_mu2, ref_var2 = _reference(mus2, vars2, gamma_mu, beta_mu, gamma_var, beta_var, eps)
    assert jnp.allclose(out_mu2, ref_mu2, atol=2e-3, rtol=2e-3)
    assert jnp.allclose(out_var2, ref_var2, atol=2e-3, rtol=2e-3)

    # Case 3: ragged input, streaming fallback (pad path) still correct.
    mus3 = jax.random.normal(k1, (10, 48), dtype=jnp.float32)
    vars3 = jnp.exp(0.5 * jax.random.normal(k2, (10, 48), dtype=jnp.float32))
    out_mu3, out_var3 = fn(mus3, vars3, gamma_mu, beta_mu, gamma_var, beta_var, eps,
                           force_streaming=True)
    jax.block_until_ready((out_mu3, out_var3))
    ref_mu3, ref_var3 = _reference(mus3, vars3, gamma_mu, beta_mu, gamma_var, beta_var, eps)
    assert jnp.allclose(out_mu3, ref_mu3, atol=2e-3, rtol=2e-3)
    assert jnp.allclose(out_var3, ref_var3, atol=2e-3, rtol=2e-3)

    print("KERNEL_OK")
</pallas_src>

<mosaic_0001>
module attributes {stable_mosaic.version = 11 : i64} {
  func.func @kernel(%arg0: memref<5xf32, #tpu.memory_space<smem>>, %arg1: memref<8x32xf32, #tpu.memory_space<vmem>>, %arg2: memref<8x32xf32, #tpu.memory_space<vmem>>, %arg3: memref<8x32xf32, #tpu.memory_space<vmem>>, %arg4: memref<8x32xf32, #tpu.memory_space<vmem>>) attributes {dimension_semantics = [], scalar_prefetch = 0 : i64, scratch_operands = 0 : i64, tpu.core_type = #tpu.core_type<tc>} {
    %c0 = arith.constant 0 : index
    %0 = memref.load %arg0[%c0] : memref<5xf32, #tpu.memory_space<smem>>
    %c1 = arith.constant 1 : index
    %1 = memref.load %arg0[%c1] : memref<5xf32, #tpu.memory_space<smem>>
    %c2 = arith.constant 2 : index
    %2 = memref.load %arg0[%c2] : memref<5xf32, #tpu.memory_space<smem>>
    %c3 = arith.constant 3 : index
    %3 = memref.load %arg0[%c3] : memref<5xf32, #tpu.memory_space<smem>>
    %c4 = arith.constant 4 : index
    %4 = memref.load %arg0[%c4] : memref<5xf32, #tpu.memory_space<smem>>
    %c0_0 = arith.constant 0 : index
    %c0_1 = arith.constant 0 : index
    %5 = vector.load %arg1[%c0_0, %c0_1] : memref<8x32xf32, #tpu.memory_space<vmem>>, vector<8x32xf32>
    %c0_2 = arith.constant 0 : index
    %c0_3 = arith.constant 0 : index
    %6 = vector.load %arg2[%c0_2, %c0_3] : memref<8x32xf32, #tpu.memory_space<vmem>>, vector<8x32xf32>
    %7 = vector.shape_cast %5 : vector<8x32xf32> to vector<1x8x32xf32>
    %cst = arith.constant dense<0.000000e+00> : vector<1xf32>
    %8 = vector.multi_reduction <add>, %7, %cst [1, 2] : vector<1x8x32xf32> to vector<1xf32>
    %9 = vector.shape_cast %8 : vector<1xf32> to vector<1x1x1xf32>
    %10 = vector.extract %9[0, 0, 0] : f32 from vector<1x1x1xf32>
    %11 = vector.broadcast %10 : f32 to vector<1x1xf32>
    %cst_4 = arith.constant 3.906250e-03 : f32
    %12 = vector.broadcast %cst_4 : f32 to vector<1x1xf32>
    %13 = arith.mulf %11, %12 : vector<1x1xf32>
    %14 = vector.broadcast %13 : vector<1x1xf32> to vector<8x32xf32>
    %15 = arith.subf %5, %14 : vector<8x32xf32>
    %16 = arith.mulf %15, %15 : vector<8x32xf32>
    %17 = vector.shape_cast %16 : vector<8x32xf32> to vector<1x8x32xf32>
    %cst_5 = arith.constant dense<0.000000e+00> : vector<1xf32>
    %18 = vector.multi_reduction <add>, %17, %cst_5 [1, 2] : vector<1x8x32xf32> to vector<1xf32>
    %19 = vector.shape_cast %18 : vector<1xf32> to vector<1x1x1xf32>
    %20 = vector.extract %19[0, 0, 0] : f32 from vector<1x1x1xf32>
    %21 = vector.broadcast %20 : f32 to vector<1x1xf32>
    %cst_6 = arith.constant 3.906250e-03 : f32
    %22 = vector.broadcast %cst_6 : f32 to vector<1x1xf32>
    %23 = arith.mulf %21, %22 : vector<1x1xf32>
    %24 = math.sqrt %23 : vector<1x1xf32>
    %25 = vector.shape_cast %6 : vector<8x32xf32> to vector<1x8x32xf32>
    %cst_7 = arith.constant dense<0.000000e+00> : vector<1xf32>
    %26 = vector.multi_reduction <add>, %25, %cst_7 [1, 2] : vector<1x8x32xf32> to vector<1xf32>
    %27 = vector.shape_cast %26 : vector<1xf32> to vector<1x1x1xf32>
    %28 = vector.extract %27[0, 0, 0] : f32 from vector<1x1x1xf32>
    %29 = vector.broadcast %28 : f32 to vector<1x1xf32>
    %cst_8 = arith.constant 3.906250e-03 : f32
    %30 = vector.broadcast %cst_8 : f32 to vector<1x1xf32>
    %31 = arith.mulf %29, %30 : vector<1x1xf32>
    %32 = vector.broadcast %31 : vector<1x1xf32> to vector<8x32xf32>
    %33 = arith.subf %6, %32 : vector<8x32xf32>
    %34 = arith.mulf %33, %33 : vector<8x32xf32>
    %35 = vector.shape_cast %34 : vector<8x32xf32> to vector<1x8x32xf32>
    %cst_9 = arith.constant dense<0.000000e+00> : vector<1xf32>
    %36 = vector.multi_reduction <add>, %35, %cst_9 [1, 2] : vector<1x8x32xf32> to vector<1xf32>
    %37 = vector.shape_cast %36 : vector<1xf32> to vector<1x1x1xf32>
    %38 = vector.extract %37[0, 0, 0] : f32 from vector<1x1x1xf32>
    %39 = vector.broadcast %38 : f32 to vector<1x1xf32>
    %cst_10 = arith.constant 3.906250e-03 : f32
    %40 = vector.broadcast %cst_10 : f32 to vector<1x1xf32>
    %41 = arith.mulf %39, %40 : vector<1x1xf32>
    %42 = math.sqrt %41 : vector<1x1xf32>
    %43 = vector.broadcast %4 : f32 to vector<1x1xf32>
    %44 = arith.addf %24, %43 : vector<1x1xf32>
    %45 = vector.broadcast %0 : f32 to vector<1x1xf32>
    %46 = arith.divf %45, %44 : vector<1x1xf32>
    %47 = arith.mulf %13, %46 : vector<1x1xf32>
    %48 = vector.broadcast %1 : f32 to vector<1x1xf32>
    %49 = arith.subf %48, %47 : vector<1x1xf32>
    %50 = vector.broadcast %4 : f32 to vector<1x1xf32>
    %51 = arith.addf %42, %50 : vector<1x1xf32>
    %52 = vector.broadcast %2 : f32 to vector<1x1xf32>
    %53 = arith.divf %52, %51 : vector<1x1xf32>
    %54 = arith.mulf %31, %53 : vector<1x1xf32>
    %55 = vector.broadcast %3 : f32 to vector<1x1xf32>
    %56 = arith.subf %55, %54 : vector<1x1xf32>
    %57 = vector.broadcast %46 : vector<1x1xf32> to vector<8x32xf32>
    %58 = arith.mulf %5, %57 : vector<8x32xf32>
    %59 = vector.broadcast %49 : vector<1x1xf32> to vector<8x32xf32>
    %60 = arith.addf %58, %59 : vector<8x32xf32>
    %c0_11 = arith.constant 0 : index
    %c0_12 = arith.constant 0 : index
    %61 = vector.load %arg3[%c0_11, %c0_12] : memref<8x32xf32, #tpu.memory_space<vmem>>, vector<8x32xf32>
    tpu.vector_store %arg3[%c0_11, %c0_12], %60 {strides = array<i32>} : memref<8x32xf32, #tpu.memory_space<vmem>>, vector<8x32xf32>,
    %62 = vector.broadcast %53 : vector<1x1xf32> to vector<8x32xf32>
    %63 = arith.mulf %6, %62 : vector<8x32xf32>
    %64 = vector.broadcast %56 : vector<1x1xf32> to vector<8x32xf32>
    %65 = arith.addf %63, %64 : vector<8x32xf32>
    %cst_13 = arith.constant 0.000000e+00 : f32
    %66 = vector.broadcast %cst_13 : f32 to vector<8x32xf32>
    %67 = arith.maximumf %65, %66 : vector<8x32xf32>
    %cst_14 = arith.constant 9.99999997E-7 : f32
    %68 = vector.broadcast %cst_14 : f32 to vector<8x32xf32>
    %69 = arith.addf %67, %68 : vector<8x32xf32>
    %c0_15 = arith.constant 0 : index
    %c0_16 = arith.constant 0 : index
    %70 = vector.load %arg4[%c0_15, %c0_16] : memref<8x32xf32, #tpu.memory_space<vmem>>, vector<8x32xf32>
    tpu.vector_store %arg4[%c0_15, %c0_16], %69 {strides = array<i32>} : memref<8x32xf32, #tpu.memory_space<vmem>>, vector<8x32xf32>,
    return
  }
}

</mosaic_0001>

<bundles_post_ra>
// kernel: distribution_layer_norm.1
= control target key start
LH: loop header
LB: loop body
LE: loop exit
PB: predicated region body
PF: predicated region fallthrough
CT: control target
= control target key end

     0   :  { %10 = vsyncpa [#allocation4], 0  ;;  %s326_s0 = inlined_call_operand.vmem [shape: f32[5], index: 0, kind: input, shape index: {}]   ;;  %s327_s1 = inlined_call_operand.vmem [shape: f32[8,32], index: 1, kind: input, shape index: {}]   ;;  %s328_s2 = inlined_call_operand.vmem [shape: f32[8,32], index: 2, kind: input, shape index: {}]   ;;  %s329_s3 = inlined_call_operand.hbm [shape: f32[8,32], index: 3, kind: output, shape index: {0}]   ;;  %s330_s4 = inlined_call_operand.hbm [shape: f32[8,32], index: 4, kind: output, shape index: {1}]  }
   0x1   :  { %11 = vsyncpa [#allocation3], 0 }
   0x2   :  { %12 = vsyncpa [#allocation7], 0  ;;  %s19_s17 = sshll.u32 %s326_s0, 4  ;;  %s20_s17 = int_to_ptr.vmem [resolvable:$true] %s19_s17 }
   0x3   :  { %s180_s18 = scalar_lea.vmem %s20_s17, 16  ;;  %p185_p1 = scmp.lt.s32.totalorder %s20_s17, %s20_s17 }
   0x4   :  { %p181_p0 = scmp.ne.s32.totalorder %s20_s17, %s180_s18  ;;  %p186_p2 = scmp.lt.s32.totalorder %s180_s18, %s180_s18 }
   0x6   :  { %p187_p3 = por %p186_p2, %p185_p1 }
   0x8   :  { %p188_p4 = pnand %p187_p3, %p181_p0 }
   0xa   :  { %191 = shalt.err (!%p188_p4)
}
   0xb   :  { %s242_s19 = smov [#allocation2]  }
   0xc   :  { %22 = dma.vmem_to_smem %s20_s17, 16, %s242_s19, [#allocation4]  }
   0xd   :  { %236 = dma.done.wait [#allocation4], 16  }
   0xe   :  { %237 = vsyncadd [#allocation4], 4294967280 }
   0xf   :  { %30 = sfence }
  0x10   :  { %v276_v0 = vld [vmem:[%s327_s1] sm:$0xff]  ;;  %vm38_vm0 = vcmask 261120   ;;  %s293_s24 = sld [smem:[#allocation2 + $0x4]]  ;;  %s31_s25 = sld [smem:[#allocation2]] }
  0x11   :  { %v39_v1 = vsel %vm38_vm0, %v276_v0, 0.0  ;;  %v283_v2 = vld [vmem:[%s328_s2] sm:$0xff]  ;;  %s157_s26 = sld [smem:[#allocation2 + $0x1]]  ;;  %s243_s27 = smov [#allocation5]  }
  0x12   :  { %40 = vadd.xlane.f32.xlu0 %v39_v1  ;;  %v72_v3 = vsel %vm38_vm0, %v283_v2, 0.0  ;;  %s134_s28 = sshll.u32 %s243_s27, 4  ;;  %s135_s28 = int_to_ptr.vmem [resolvable:$true] %s134_s28 }
  0x13   :  { %73 = vadd.xlane.f32.xlu1 %v72_v3  ;;  %s192_s29 = scalar_lea.vmem %s135_s28, 128  ;;  %p197_p6 = scmp.lt.s32.totalorder %s135_s28, %s135_s28 }
  0x14   :  { %p193_p5 = scmp.ne.s32.totalorder %s135_s28, %s192_s29  ;;  %p198_p7 = scmp.lt.s32.totalorder %s192_s29, %s192_s29 }
  0x16   :  { %v105_v40 = vstv %s293_s24  ;;  %v107_v44 = vstv %s31_s25  ;;  %p199_p8 = por %p198_p7, %p197_p6 }
  0x17   :  { %v111_v47 = vstv %s157_s26 }
  0x18   :  { %p200_p9 = pnand %p199_p8, %p193_p5 }
  0x9f   :  { %v41_v4 = vpop.xlane.xlu0 %40 }
  0xa0   :  { %v42_v5 = vrot.slane %v41_v4, 4  ;;  %v74_v16 = vpop.xlane.xlu1 %73 }
  0xa1   :  { %v75_v17 = vrot.slane %v74_v16, 4 }
  0xa2   :  { %v43_v6 = vadd.f32 %v42_v5, %v41_v4 }
  0xa3   :  { %v76_v18 = vadd.f32 %v75_v17, %v74_v16 }
  0xa4   :  { %v44_v7 = vrot.slane %v43_v6, 2 }
  0xa5   :  { %v77_v19 = vrot.slane %v76_v18, 2 }
  0xa6   :  { %v45_v8 = vadd.f32 %v44_v7, %v43_v6 }
  0xa7   :  { %v78_v23 = vadd.f32 %v77_v19, %v76_v18 }
  0xa8   :  { %v46_v9 = vrot.slane %v45_v8, 1 }
  0xa9   :  { %v79_v26 = vrot.slane %v78_v23, 1 }
  0xaa   :  { %v47_v10 = vadd.f32 %v46_v9, %v45_v8 }
  0xab   :  { %v80_v29 = vadd.f32 %v79_v26, %v78_v23 }
  0xac   :  { %161 = vpush %v47_v10 }
  0xdd   :  { %s162_s1 = spop %161 }
  0xde   :  { %v49_v11 = vstv %s162_s1 }
  0xdf   :  { %v50_v12 = vmul.f32 0.00390625, %v49_v11 }
  0xe1   :  { %v51_v13 = vsub.f32 %v276_v0, %v50_v12 }
  0xe3   :  { %v52_v14 = vmul.f32 %v51_v13, %v51_v13 }
  0xe5   :  { %v53_v15 = vsel %vm38_vm0, %v52_v14, 0.0 }
  0xe6   :  { %54 = vadd.xlane.f32.xlu0 %v53_v15 }
 0x173   :  { %v55_v20 = vpop.xlane.xlu0 %54 }
 0x174   :  { %v56_v21 = vrot.slane %v55_v20, 4 }
 0x176   :  { %v57_v22 = vadd.f32 %v56_v21, %v55_v20 }
 0x178   :  { %v58_v24 = vrot.slane %v57_v22, 2 }
 0x17a   :  { %v59_v25 = vadd.f32 %v58_v24, %v57_v22 }
 0x17c   :  { %v60_v27 = vrot.slane %v59_v25, 1 }
 0x17e   :  { %v61_v28 = vadd.f32 %v60_v27, %v59_v25 }
 0x180   :  { %163 = vpush %v61_v28 }
 0x181   :  { %165 = vpush %v80_v29 }
 0x1b1   :  { %s164_s2 = spop %163 }
 0x1b2   :  { %v63_v30 = vstv %s164_s2  ;;  %s166_s23 = spop %165 }
 0x1b3   :  { %v64_v31 = vmul.f32 0.00390625, %v63_v30  ;;  %v82_v32 = vstv %s166_s23 }
 0x1b4   :  { %v289_v33 = vmul.f32 0.00390625, %v82_v32 }
 0x1b5   :  { %172 = vrsqrt.f32 %v64_v31  ;;  %vm67_vm1 = vcmp.eq.f32.partialorder %v64_v31, inf  ;;  %v70_v39 = vand.u32 2147483648, %v64_v31  ;;  %vm69_vm2 = vcmp.eq.f32.partialorder %v64_v31, 0.0 }
 0x1b6   :  { %v84_v34 = vsub.f32 %v283_v2, %v289_v33 }
 0x1b8   :  { %v85_v35 = vmul.f32 %v84_v34, %v84_v34 }
 0x1ba   :  { %v86_v36 = vsel %vm38_vm0, %v85_v35, 0.0 }
 0x1bb   :  { %87 = vadd.xlane.f32.xlu1 %v86_v36 }
 0x1bf   :  { %v173_v37 = vpop.eup %172 }
 0x1c0   :  { %v66_v38 = vmul.f32 %v173_v37, %v64_v31 }
 0x1c2   :  { %v68_v41 = vsel %vm67_vm1, %v64_v31, %v66_v38 }
 0x1c3   :  { %v71_v42 = vsel %vm69_vm2, %v70_v39, %v68_v41 }
 0x1c4   :  { %v106_v43 = vadd.f32 %v105_v40, %v71_v42 }
 0x1c6   :  { %174 = vrcp.f32 %v106_v43 }
 0x1d0   :  { %v175_v45 = vpop.eup %174 }
 0x1d1   :  { %v109_v46 = vmul.f32 %v175_v45, %v107_v44 }
 0x1d3   :  { %v110_v48 = vmul.f32 %v109_v46, %v50_v12  ;;  %v120_v50 = vmul.f32 %v109_v46, %v276_v0 }
 0x1d5   :  { %v112_v49 = vsub.f32 %v111_v47, %v110_v48 }
 0x1d7   :  { %v121_v51 = vadd.f32 %v120_v50, %v112_v49 }
 0x1d9   :  { %122 = vst.msk [vmem:[#allocation5] sm:$0xff] %vm38_vm0, %v121_v51 }
 0x1da   :  { %203 = shalt.err (!%p200_p9)
}
 0x1db   :  { %s204_s6 = scalar_lea.hbm %s329_s3, 128 }
 0x1dc   :  { %p205_p10 = scmp.ne.s32.totalorder %s329_s3, %s204_s6  ;;  %p208_p11 = scmp.lt.u32.totalorder %s204_s6, %s329_s3 }
 0x1de   :  { %p210_p12 = pnand %p208_p11, %p205_p10 }
 0x1e0   :  { %213 = shalt.err (!%p210_p12)
}
 0x1e1   :  { %137 = dma.vmem_to_hbm [thread:$0]  %s135_s28, 128, %s329_s3, [#allocation3]  }
 0x1e2   :  { %s158_s3 = sld [smem:[#allocation2 + $0x2]]  ;;  %s159_s14 = sld [smem:[#allocation2 + $0x3]] }
 0x1e3   :  { %s244_s15 = smov [#allocation6]  }
 0x1e4   :  { %s144_s16 = sshll.u32 %s244_s15, 4  ;;  %s145_s16 = int_to_ptr.vmem [resolvable:$true] %s144_s16 }
 0x1e5   :  { %s214_s17 = scalar_lea.vmem %s145_s16, 128  ;;  %p219_p0 = scmp.lt.s32.totalorder %s145_s16, %s145_s16 }
 0x1e6   :  { %p215_p13 = scmp.ne.s32.totalorder %s145_s16, %s214_s17  ;;  %p220_p1 = scmp.lt.s32.totalorder %s214_s17, %s214_s17 }
 0x1e8   :  { %v114_v4 = vstv %s158_s3  ;;  %v118_v7 = vstv %s159_s14  ;;  %p221_p2 = por %p220_p1, %p219_p0 }
 0x1ea   :  { %p222_p3 = pnand %p221_p2, %p215_p13 }
 0x248   :  { %v88_v52 = vpop.xlane.xlu1 %87 }
 0x249   :  { %v89_v53 = vrot.slane %v88_v52, 4 }
 0x24b   :  { %v90_v54 = vadd.f32 %v89_v53, %v88_v52 }
 0x24d   :  { %v91_v55 = vrot.slane %v90_v54, 2 }
 0x24f   :  { %v92_v56 = vadd.f32 %v91_v55, %v90_v54 }
 0x251   :  { %v93_v57 = vrot.slane %v92_v56, 1 }
 0x253   :  { %v94_v58 = vadd.f32 %v93_v57, %v92_v56 }
 0x255   :  { %167 = vpush %v94_v58 }
 0x286   :  { %s168_s13 = spop %167 }
 0x287   :  { %v96_v59 = vstv %s168_s13 }
 0x288   :  { %v97_v60 = vmul.f32 0.00390625, %v96_v59 }
 0x28a   :  { %176 = vrsqrt.f32 %v97_v60  ;;  %vm100_vm3 = vcmp.eq.f32.partialorder %v97_v60, inf  ;;  %v103_v63 = vand.u32 2147483648, %v97_v60  ;;  %vm102_vm4 = vcmp.eq.f32.partialorder %v97_v60, 0.0 }
 0x294   :  { %v177_v61 = vpop.eup %176 }
 0x295   :  { %v99_v62 = vmul.f32 %v177_v61, %v97_v60 }
 0x297   :  { %v101_v0 = vsel %vm100_vm3, %v97_v60, %v99_v62 }
 0x298   :  { %v104_v1 = vsel %vm102_vm4, %v103_v63, %v101_v0 }
 0x299   :  { %v113_v3 = vadd.f32 %v105_v40, %v104_v1 }
 0x29b   :  { %178 = vrcp.f32 %v113_v3 }
 0x2a5   :  { %v179_v5 = vpop.eup %178 }
 0x2a6   :  { %v116_v6 = vmul.f32 %v179_v5, %v114_v4 }
 0x2a8   :  { %v117_v8 = vmul.f32 %v116_v6, %v289_v33  ;;  %v123_v10 = vmul.f32 %v116_v6, %v283_v2 }
 0x2aa   :  { %v119_v9 = vsub.f32 %v118_v7, %v117_v8 }
 0x2ac   :  { %v124_v11 = vadd.f32 %v123_v10, %v119_v9 }
 0x2ae   :  { %v125_v12 = vmax.f32 %v124_v11, 0.0 }
 0x2b0   :  { %v126_v13 = vadd.f32 1e-06, %v125_v12 }
 0x2b2   :  { %127 = vst.msk [vmem:[#allocation6] sm:$0xff] %vm38_vm0, %v126_v13 }
 0x2b3   :  { %225 = shalt.err (!%p222_p3)
}
 0x2b4   :  { %s226_s20 = scalar_lea.hbm %s330_s4, 128 }
 0x2b5   :  { %p227_p4 = scmp.ne.s32.totalorder %s330_s4, %s226_s20  ;;  %p230_p5 = scmp.lt.u32.totalorder %s226_s20, %s330_s4 }
 0x2b7   :  { %p232_p6 = pnand %p230_p5, %p227_p4 }
 0x2b9   :  { %235 = shalt.err (!%p232_p6)
}
 0x2ba   :  { %147 = dma.vmem_to_hbm [thread:$0]  %s145_s16, 128, %s330_s4, [#allocation7]  }
 0x2bb   :  { %238 = dma.done.wait [#allocation3], 128  }
 0x2bc   :  { %239 = vsyncadd [#allocation3], 4294967168 }
 0x2bd   :  { %240 = dma.done.wait [#allocation7], 128  }
 0x2be   :  { %241 = vsyncadd [#allocation7], 4294967168 }
 0x2bf   :  { %154 = vsyncpa [#allocation3], 1 }
 0x2c0   :  { %155 = vsyncpa [#allocation7], 1 }
 0x2c1   :  { %156 = vsyncpa [#allocation4], 1 }

</bundles_post_ra>
